<compile_context>
chip_gen: v6e
topology: v6e:2x2x1
jax: 0.10.0
libtpu: 0.0.40
codegen_flags: <defaults>
</compile_context>

<pallas_src>
import numpy as np
import jax
import jax.numpy as jnp
from jax.experimental import pallas as pl
from jax.experimental.pallas import tpu as pltpu


# Python float (NOT a jnp scalar): jnp scalars are traced arrays and would be
# captured as kernel constants, which pallas_call rejects.
NEG_BIG = -1e30


def _round_up(x, m):
    return ((x + m - 1) // m) * m


# ----------------------------- Phase 1: projection ---------------------------
def _proj_kernel(x_ref, w_ref, b_ref, h_ref, logit_ref):
    # H_aug = X @ W_aug + b_aug  (f32 MXU matmul; O(N) phase, cost ~nothing).
    f_out = h_ref.shape[-1]
    h_aug = (jnp.dot(x_ref[...], w_ref[...], preferred_element_type=jnp.float32)
             + b_ref[...])
    h_ref[...] = h_aug[:, :f_out].astype(h_ref.dtype)        # bf16 features
    logit_ref[...] = h_aug[:, f_out:]                        # f32 [rows, 2]


# ------------------- Phase 2: masked online-softmax aggregation --------------
def _attn_agg_kernel(h_ref, asrc_ref, adst_ref, adj_ref, out_ref, m_ref, l_ref):
    si = pl.program_id(1)                     # src (reduction) grid axis

    @pl.when(si == 0)
    def _init():
        m_ref[...] = jnp.full_like(m_ref, NEG_BIG)
        l_ref[...] = jnp.zeros_like(l_ref)
        out_ref[...] = jnp.zeros_like(out_ref)   # out_ref doubles as accumulator

    adst = adst_ref[...]                          # [td, 1]  f32
    asrc = asrc_ref[...]                          # [1, ts]  f32

    # Dense scores for this block have rank-1 structure:
    #   s[d, s] = leaky_relu(a_dst[d] + a_src[s])   (biases folded in phase 1).
    s = adst + asrc                               # [td, ts]
    s = jnp.where(s > 0, s, 0.2 * s)              # leaky_relu(0.2)
    mask = adj_ref[...] > 0                       # int8 adjacency

    # Monotonicity-based upper bound on the row max (leaky_relu is monotone):
    #   s[d, :] <= leaky_relu(a_dst[d] + max_s a_src[s]).
    # Any finite value >= the true row max keeps online softmax exact, and is
    # O(td) VPU work instead of a (td x ts) XLU reduction.
    src_max = jnp.max(asrc)                       # scalar
    bound = adst + src_max
    bound = jnp.where(bound > 0, bound, 0.2 * bound)

    m_old = m_ref[...]
    m_new = jnp.maximum(m_old, bound)
    alpha = jnp.exp(m_old - m_new)
    # The where keeps rows with no edges at exactly zero (isolated nodes -> 0).
    p = jnp.where(mask, jnp.exp(s - m_new), 0.0)  # [td, ts] f32, all <= 1

    l_ref[...] = alpha * l_ref[...] + jnp.sum(p, axis=-1, keepdims=True)
    # bf16 MXU aggregation with f32 accumulation directly into out_ref.
    out_ref[...] = alpha * out_ref[...] + jnp.dot(
        p.astype(jnp.bfloat16), h_ref[...], preferred_element_type=jnp.float32)
    m_ref[...] = m_new

    @pl.when(si == pl.num_programs(1) - 1)
    def _finalize():
        inv = pl.reciprocal(jnp.maximum(l_ref[...], 1e-30), approx=True)  # EUP
        out_ref[...] = out_ref[...] * inv


def global_attention_layer(features, W, lin_b, attn_w, attn_b, adj,
                           *, tile_dst=256, tile_src=1024):
    """Pallas forward.

    features [N, F_in], W [F_in, F_out] (transposed vs. torch Linear.weight),
    lin_b [F_out], attn_w [2*F_out, 1], attn_b [1],
    adj [N_dst, N_src] 0/1 mask (adj[d, s] = 1 where edge s -> d exists).
    Returns [N, F_out] float32.

    Tile notes: sweep tile_src (512-2048) / tile_dst (256-512) on real shapes;
    on v7x keep N_pad/tile_dst >= 2 so the "parallel" dst axis can shard across
    the two TensorCores.
    """
    n, f_in = features.shape
    f_out = W.shape[1]
    f_aug = f_out + 2

    # Clamp tiles to the (padded) problem and keep them multiples of 128 so the
    # (8, 128) block constraint holds.
    n128 = _round_up(n, 128)
    td = min(max(int(tile_dst), 128), n128)
    ts = min(max(int(tile_src), 128), n128)
    td = (td // 128) * 128
    ts = (ts // 128) * 128

    # Pad dst rows and src cols independently (no lcm blow-up of the N^2 adj).
    n_pad_dst = _round_up(n, td)
    n_pad_src = _round_up(n, ts)
    n_pad1 = max(n_pad_dst, n_pad_src)

    w_src = attn_w[:f_out, 0]                               # [F_out]
    w_dst = attn_w[f_out:, 0]                               # [F_out]

    # Fold the attention projections into two extra columns of W so one X@W_aug
    # matmul yields h plus the per-node src/dst logits (attn_b folded into the
    # dst bias; no degenerate output-dim-1 matmuls).
    W_aug = jnp.concatenate(
        [W, (W @ w_src)[:, None], (W @ w_dst)[:, None]], axis=1
    ).astype(jnp.float32)                                                 # [F_in, F_aug]
    b_aug = jnp.concatenate(
        [lin_b, (lin_b @ w_src)[None], (lin_b @ w_dst + attn_b[0])[None]]
    )[None, :].astype(jnp.float32)                                        # [1, F_aug]

    x_p = jnp.pad(features.astype(jnp.float32), ((0, n_pad1 - n), (0, 0)))
    adj_i8 = jnp.pad((adj > 0).astype(jnp.int8),
                     ((0, n_pad_dst - n), (0, n_pad_src - n)))

    # ---------------- Phase 1: H_aug = X @ W_aug + b_aug ----------------
    tile_rows = 128
    for cand in (512, 256):
        if n_pad1 % cand == 0:
            tile_rows = cand
            break

    h_bf16, logits = pl.pallas_call(
        _proj_kernel,
        out_shape=(jax.ShapeDtypeStruct((n_pad1, f_out), jnp.bfloat16),
                   jax.ShapeDtypeStruct((n_pad1, 2), jnp.float32)),
        grid=(n_pad1 // tile_rows,),
        in_specs=[
            pl.BlockSpec((tile_rows, f_in), lambda i: (i, 0)),
            pl.BlockSpec((f_in, f_aug), lambda i: (0, 0)),
            pl.BlockSpec((1, f_aug), lambda i: (0, 0)),
        ],
        out_specs=(
            pl.BlockSpec((tile_rows, f_out), lambda i: (i, 0)),
            pl.BlockSpec((tile_rows, 2), lambda i: (i, 0)),
        ),
        compiler_params=pltpu.CompilerParams(
            dimension_semantics=("parallel",)),
    )(x_p, W_aug, b_aug)

    # Tiny XLA-side reshapes between the two pallas_calls (O(N) bytes).
    h_src = h_bf16 if n_pad_src == n_pad1 else h_bf16[:n_pad_src]   # bf16 [n_src, F_out]
    a_src_row = logits[:n_pad_src, 0][None, :]                      # f32  [1, n_src]
    a_dst_col = logits[:n_pad_dst, 1:2]                             # f32  [n_dst, 1]

    # Explicit VMEM budget: double-buffered streamed inputs + resident out +
    # m/l scratch, with headroom.  Keeps large tiles inside v7x's 64 MiB
    # physical VMEM while lifting v5e's 16 MiB default scoped limit.
    est = (2 * (td * ts                 # adj int8
                + ts * f_out * 2        # h bf16
                + td * 4 + ts * 4)      # a_dst, a_src
           + 2 * td * f_out * 4         # out f32 (double-buffered across dst)
           + 2 * td * 4)                # m, l scratch
    vmem_limit = int(min(max(4 * est, 32 * 1024 * 1024), 64 * 1024 * 1024))

    # ------------- Phase 2: tiled masked online-softmax aggregation -------------
    out = pl.pallas_call(
        _attn_agg_kernel,
        out_shape=jax.ShapeDtypeStruct((n_pad_dst, f_out), jnp.float32),
        grid=(n_pad_dst // td, n_pad_src // ts),
        in_specs=[
            pl.BlockSpec((ts, f_out), lambda di, si: (si, 0)),     # h (src rows, bf16)
            pl.BlockSpec((1, ts), lambda di, si: (0, si)),         # a_src row
            pl.BlockSpec((td, 1), lambda di, si: (di, 0)),         # a_dst col
            pl.BlockSpec((td, ts), lambda di, si: (di, si)),       # adj int8
        ],
        out_specs=pl.BlockSpec((td, f_out), lambda di, si: (di, 0)),
        scratch_shapes=[
            pltpu.VMEM((td, 1), jnp.float32),      # m (running max bound)
            pltpu.VMEM((td, 1), jnp.float32),      # l (running denom)
        ],
        compiler_params=pltpu.CompilerParams(
            dimension_semantics=("parallel", "arbitrary"),
            vmem_limit_bytes=vmem_limit),
    )(h_src, a_src_row, a_dst_col, adj_i8)

    return out[:n]


# ------------------------------- reference -----------------------------------
def reference_forward(features, W, lin_b, attn_w, attn_b, src, dst, n_nodes):
    """Pure numpy edge-list reference with identical semantics to the torch code."""
    h = features @ W + lin_b
    hs, hd = h[src], h[dst]
    s = (np.concatenate([hs, hd], axis=-1) @ attn_w).squeeze(-1) + attn_b[0]
    s = np.where(s > 0, s, 0.2 * s)                      # leaky_relu(0.2)
    out = np.zeros((n_nodes, W.shape[1]), dtype=np.float32)
    for d in range(n_nodes):
        idx = np.where(dst == d)[0]
        if idx.size == 0:
            continue
        e = np.exp(s[idx] - s[idx].max())
        a = e / e.sum()                                  # edge_softmax per dst
        out[d] = (a[:, None] * h[src[idx]]).sum(axis=0)  # u_mul_e + sum
    return out


if __name__ == "__main__":
    # Small but representative problem: exercises padding and the (dst x src) grid.
    N, in_feats, out_feats = 200, 16, 32

    key = jax.random.PRNGKey(0)
    k1, k2, k3, k4, k5 = jax.random.split(key, 5)

    # Deterministic parameter init (xavier uniform like reset_parameters()).
    lim_w = float(np.sqrt(6.0 / (in_feats + out_feats)))
    W = jax.random.uniform(k1, (in_feats, out_feats), jnp.float32, -lim_w, lim_w)
    lim_b = float(1.0 / np.sqrt(in_feats))
    lin_b = jax.random.uniform(k2, (out_feats,), jnp.float32, -lim_b, lim_b)
    lim_a = float(np.sqrt(6.0 / (2 * out_feats + 1)))
    attn_w = jax.random.uniform(k3, (2 * out_feats, 1), jnp.float32, -lim_a, lim_a)
    attn_b = jnp.zeros((1,), jnp.float32)

    # Node features and a random graph (with self-loops).  adj[d, s] = edge s->d.
    features = jax.random.normal(k4, (N, in_feats), dtype=jnp.float32)
    adj = jnp.asarray(jax.random.bernoulli(k5, 0.35, (N, N)), jnp.float32)
    adj = jnp.maximum(adj, jnp.eye(N, dtype=jnp.float32))

    # Edge-list reference (same semantics as the DGL graph ops).
    adj_np = np.array(adj)
    dst_idx, src_idx = np.nonzero(adj_np)
    ref = reference_forward(np.array(features), np.array(W), np.array(lin_b),
                            np.array(attn_w), np.array(attn_b),
                            src_idx, dst_idx, N)

    # Run the default (large-tile) config and a small-tile config that
    # exercises the multi-step online softmax across several src tiles.
    for td_ts in ((256, 1024), (128, 128)):
        out = global_attention_layer(features, W, lin_b, attn_w, attn_b, adj,
                                     tile_dst=td_ts[0], tile_src=td_ts[1])
        out = jax.block_until_ready(out)
        np.testing.assert_allclose(np.array(out), ref, rtol=2e-2, atol=2e-2)

    print("KERNEL_OK")
</pallas_src>

<mosaic_0001>
module attributes {stable_mosaic.version = 11 : i64} {
  func.func @_proj_kernel(%arg0: i32, %arg1: memref<256x16xf32, #tpu.memory_space<vmem>>, %arg2: memref<16x34xf32, #tpu.memory_space<vmem>>, %arg3: memref<1x34xf32, #tpu.memory_space<vmem>>, %arg4: memref<256x32xbf16, #tpu.memory_space<vmem>>, %arg5: memref<256x2xf32, #tpu.memory_space<vmem>>) attributes {dimension_semantics = [#tpu.dimension_semantics<parallel>], iteration_bounds = array<i64: 1>, scalar_prefetch = 0 : i64, scratch_operands = 0 : i64, tpu.core_type = #tpu.core_type<tc>, window_params = [{transform_indices = @transform_0, window_bounds = array<i64: 256, 16>}, {pipeline_mode = #tpu.pipeline_mode<synchronous>, transform_indices = @transform_1, window_bounds = array<i64: 16, 34>}, {pipeline_mode = #tpu.pipeline_mode<synchronous>, transform_indices = @transform_2, window_bounds = array<i64: 1, 34>}, {transform_indices = @transform_3, window_bounds = array<i64: 256, 32>}, {transform_indices = @transform_4, window_bounds = array<i64: 256, 2>}]} {
    %c0 = arith.constant 0 : index
    %c0_0 = arith.constant 0 : index
    %0 = vector.load %arg1[%c0, %c0_0] : memref<256x16xf32, #tpu.memory_space<vmem>>, vector<256x16xf32>
    %c0_1 = arith.constant 0 : index
    %c0_2 = arith.constant 0 : index
    %1 = vector.load %arg2[%c0_1, %c0_2] : memref<16x34xf32, #tpu.memory_space<vmem>>, vector<16x34xf32>
    %cst = arith.constant dense<0.000000e+00> : vector<256x34xf32>
    %2 = tpu.matmul %0, %1, %cst {dimension_numbers = #tpu.dot_dimension_numbers<[1], [0], [0], [1], [0, 0, 1, 1], [], []>} : vector<256x16xf32>, vector<16x34xf32>, vector<256x34xf32> -> vector<256x34xf32>
    %c0_3 = arith.constant 0 : index
    %c0_4 = arith.constant 0 : index
    %3 = vector.load %arg3[%c0_3, %c0_4] : memref<1x34xf32, #tpu.memory_space<vmem>>, vector<1x34xf32>
    %4 = vector.broadcast %3 : vector<1x34xf32> to vector<256x34xf32>
    %5 = arith.addf %2, %4 : vector<256x34xf32>
    %6 = vector.extract_strided_slice %5 {offsets = [0, 0], sizes = [256, 32], strides = [1, 1]} : vector<256x34xf32> to vector<256x32xf32>
    %7 = arith.truncf %6 : vector<256x32xf32> to vector<256x32xbf16>
    %c0_5 = arith.constant 0 : index
    %c0_6 = arith.constant 0 : index
    %8 = vector.load %arg4[%c0_5, %c0_6] : memref<256x32xbf16, #tpu.memory_space<vmem>>, vector<256x32xbf16>
    tpu.vector_store %arg4[%c0_5, %c0_6], %7 {strides = array<i32>} : memref<256x32xbf16, #tpu.memory_space<vmem>>, vector<256x32xbf16>,
    %9 = vector.extract_strided_slice %5 {offsets = [0, 32], sizes = [256, 2], strides = [1, 1]} : vector<256x34xf32> to vector<256x2xf32>
    %c0_7 = arith.constant 0 : index
    %c0_8 = arith.constant 0 : index
    %10 = vector.load %arg5[%c0_7, %c0_8] : memref<256x2xf32, #tpu.memory_space<vmem>>, vector<256x2xf32>
    tpu.vector_store %arg5[%c0_7, %c0_8], %9 {strides = array<i32>} : memref<256x2xf32, #tpu.memory_space<vmem>>, vector<256x2xf32>,
    return
  }
  func.func @transform_0(%arg0: i32) -> (i32, i32) {
    %c0_i32 = arith.constant 0 : i32
    %c0_i32_0 = arith.constant 0 : i32
    return %arg0, %c0_i32 : i32, i32
  }
  func.func @transform_1(%arg0: i32) -> (i32, i32) {
    %c0_i32 = arith.constant 0 : i32
    %c0_i32_0 = arith.constant 0 : i32
    %c0_i32_1 = arith.constant 0 : i32
    return %c0_i32, %c0_i32_0 : i32, i32
  }
  func.func @transform_2(%arg0: i32) -> (i32, i32) {
    %c0_i32 = arith.constant 0 : i32
    %c0_i32_0 = arith.constant 0 : i32
    %c0_i32_1 = arith.constant 0 : i32
    return %c0_i32, %c0_i32_0 : i32, i32
  }
  func.func @transform_3(%arg0: i32) -> (i32, i32) {
    %c0_i32 = arith.constant 0 : i32
    %c0_i32_0 = arith.constant 0 : i32
    return %arg0, %c0_i32 : i32, i32
  }
  func.func @transform_4(%arg0: i32) -> (i32, i32) {
    %c0_i32 = arith.constant 0 : i32
    %c0_i32_0 = arith.constant 0 : i32
    return %arg0, %c0_i32 : i32, i32
  }
}

</mosaic_0001>

<bundles_post_ra>
// kernel: tpu_custom_call.1
= control target key start
LH: loop header
LB: loop body
LE: loop exit
PB: predicated region body
PF: predicated region fallthrough
CT: control target
= control target key end

     0   :  { %vm57_vm0 = vcmask 130048   ;;  %vm507_vm1 = vcmask 257024   ;;  %vm668_vm2 = vcmask 15360   ;;  %s1412_s1 = inlined_call_operand.vmem [shape: f32[16,34], index: 1, kind: input, shape index: {}]   ;;  %s1413_s0 = inlined_call_operand.vmem [shape: f32[256,16], index: 0, kind: input, shape index: {}]   ;;  %s1414_s2 = inlined_call_operand.vmem [shape: f32[1,34], index: 2, kind: input, shape index: {}]   ;;  %s1415_s3 = inlined_call_operand.vmem [shape: bf16[256,32], index: 3, kind: output, shape index: {0}]   ;;  %s1416_s4 = inlined_call_operand.vmem [shape: f32[256,2], index: 4, kind: output, shape index: {1}]  }
   0x1   :  { %v49_v0 = vld [vmem:[%s1412_s1 + $0x8] sm:$0xff]  ;;  %v48_v1 = vld [vmem:[%s1412_s1] sm:$0xff]  ;;  %v18_v6 = vld [vmem:[%s1413_s0 + $0x10] sm:$0xff] }
   0x2   :  { %840 = vmatprep.subr.mxu0 %v49_v0  ;;  %892 = vmatprep.subr.mxu1 %v49_v0  ;;  %v16_v2 = vld [vmem:[%s1413_s0] sm:$0xff]  ;;  %v17_v4 = vld [vmem:[%s1413_s0 + $0x8] sm:$0xff]  ;;  %v34_v7 = vld [vmem:[%s1413_s0 + $0x90] sm:$0xff] }
   0x3   :  { %841 = vmatpush3.msra.mxu0 %v49_v0  ;;  %894 = vmatpush3.msra.mxu1 %v49_v0  ;;  %v32_v3 = vld [vmem:[%s1413_s0 + $0x80] sm:$0xff]  ;;  %v33_v5 = vld [vmem:[%s1413_s0 + $0x88] sm:$0xff]  ;;  %v19_v8 = vld [vmem:[%s1413_s0 + $0x18] sm:$0xff] }
   0x4   :  { %842 = vmatprep.subr.mxu0 %v48_v1  ;;  %893 = vmatprep.subr.mxu1 %v48_v1  ;;  %v35_v9 = vld [vmem:[%s1413_s0 + $0x98] sm:$0xff]  ;;  %v20_v10 = vld [vmem:[%s1413_s0 + $0x20] sm:$0xff]  ;;  %v21_v12 = vld [vmem:[%s1413_s0 + $0x28] sm:$0xff] }
   0x5   :  { %843 = vmatpush3.msra.mxu0 %v48_v1  ;;  %895 = vmatpush3.msra.mxu1 %v48_v1  ;;  %v36_v11 = vld [vmem:[%s1413_s0 + $0xa0] sm:$0xff]  ;;  %v37_v13 = vld [vmem:[%s1413_s0 + $0xa8] sm:$0xff]  ;;  %v22_v14 = vld [vmem:[%s1413_s0 + $0x30] sm:$0xff] }
   0x6   :  { %844 = vmatprep.mubr.msk.f32.mxu0 %vm57_vm0, %v16_v2  ;;  %868 = vmatprep.mubr.msk.f32.mxu1 %vm57_vm0, %v32_v3  ;;  %v38_v15 = vld [vmem:[%s1413_s0 + $0xb0] sm:$0xff]  ;;  %v23_v16 = vld [vmem:[%s1413_s0 + $0x38] sm:$0xff]  ;;  %v24_v18 = vld [vmem:[%s1413_s0 + $0x40] sm:$0xff] }
   0x7   :  { %845 = vmatmul.mubr.msk.f32.vlgmr.msra.gmra.mxu0 %vm57_vm0, %v17_v4  ;;  %869 = vmatmul.mubr.msk.f32.vlgmr.msra.gmra.mxu1 %vm57_vm0, %v33_v5  ;;  %v39_v17 = vld [vmem:[%s1413_s0 + $0xb8] sm:$0xff]  ;;  %v40_v19 = vld [vmem:[%s1413_s0 + $0xc0] sm:$0xff]  ;;  %v25_v20 = vld [vmem:[%s1413_s0 + $0x48] sm:$0xff] }
   0x8   :  { %847 = vmatprep.mubr.msk.f32.mxu0 %vm57_vm0, %v18_v6  ;;  %871 = vmatprep.mubr.msk.f32.mxu1 %vm57_vm0, %v34_v7  ;;  %v41_v21 = vld [vmem:[%s1413_s0 + $0xc8] sm:$0xff]  ;;  %v26_v22 = vld [vmem:[%s1413_s0 + $0x50] sm:$0xff]  ;;  %v27_v24 = vld [vmem:[%s1413_s0 + $0x58] sm:$0xff] }
   0x9   :  { %v42_v23 = vld [vmem:[%s1413_s0 + $0xd0] sm:$0xff]  ;;  %v43_v25 = vld [vmem:[%s1413_s0 + $0xd8] sm:$0xff]  ;;  %v28_v26 = vld [vmem:[%s1413_s0 + $0x60] sm:$0xff] }
   0xa   :  { %v44_v27 = vld [vmem:[%s1413_s0 + $0xe0] sm:$0xff]  ;;  %v29_v28 = vld [vmem:[%s1413_s0 + $0x68] sm:$0xff]  ;;  %v30_v30 = vld [vmem:[%s1413_s0 + $0x70] sm:$0xff] }
   0xb   :  { %848 = vmatmul.mubr.msk.f32.gmra.mxu0 %vm57_vm0, %v19_v8  ;;  %872 = vmatmul.mubr.msk.f32.gmra.mxu1 %vm57_vm0, %v35_v9  ;;  %v45_v29 = vld [vmem:[%s1413_s0 + $0xe8] sm:$0xff]  ;;  %v46_v31 = vld [vmem:[%s1413_s0 + $0xf0] sm:$0xff]  ;;  %v31_v32 = vld [vmem:[%s1413_s0 + $0x78] sm:$0xff] }
   0xc   :  { %850 = vmatprep.mubr.msk.f32.mxu0 %vm57_vm0, %v20_v10  ;;  %874 = vmatprep.mubr.msk.f32.mxu1 %vm57_vm0, %v36_v11  ;;  %v47_v33 = vld [vmem:[%s1413_s0 + $0xf8] sm:$0xff]  ;;  %v1060_v34 = vld [vmem:[%s1414_s2] ss:$0 sm:$0xff]  ;;  %s897_s0 = smov 96  }
   0xf   :  { %851 = vmatmul.mubr.msk.f32.gmra.mxu0 %vm57_vm0, %v21_v12  ;;  %875 = vmatmul.mubr.msk.f32.gmra.mxu1 %vm57_vm0, %v37_v13 }
  0x10   :  { %853 = vmatprep.mubr.msk.f32.mxu0 %vm57_vm0, %v22_v14  ;;  %877 = vmatprep.mubr.msk.f32.mxu1 %vm57_vm0, %v38_v15 }
  0x13   :  { %854 = vmatmul.mubr.msk.f32.gmra.mxu0 %vm57_vm0, %v23_v16  ;;  %878 = vmatmul.mubr.msk.f32.gmra.mxu1 %vm57_vm0, %v39_v17 }
  0x14   :  { %856 = vmatprep.mubr.msk.f32.mxu0 %vm57_vm0, %v24_v18  ;;  %880 = vmatprep.mubr.msk.f32.mxu1 %vm57_vm0, %v40_v19 }
  0x17   :  { %857 = vmatmul.mubr.msk.f32.gmra.mxu0 %vm57_vm0, %v25_v20  ;;  %881 = vmatmul.mubr.msk.f32.gmra.mxu1 %vm57_vm0, %v41_v21 }
  0x18   :  { %859 = vmatprep.mubr.msk.f32.mxu0 %vm57_vm0, %v26_v22  ;;  %883 = vmatprep.mubr.msk.f32.mxu1 %vm57_vm0, %v42_v23 }
  0x1b   :  { %860 = vmatmul.mubr.msk.f32.gmra.mxu0 %vm57_vm0, %v27_v24  ;;  %884 = vmatmul.mubr.msk.f32.gmra.mxu1 %vm57_vm0, %v43_v25 }
  0x1c   :  { %862 = vmatprep.mubr.msk.f32.mxu0 %vm57_vm0, %v28_v26  ;;  %886 = vmatprep.mubr.msk.f32.mxu1 %vm57_vm0, %v44_v27 }
  0x1f   :  { %863 = vmatmul.mubr.msk.f32.gmra.mxu0 %vm57_vm0, %v29_v28  ;;  %887 = vmatmul.mubr.msk.f32.gmra.mxu1 %vm57_vm0, %v45_v29 }
  0x20   :  { %865 = vmatprep.mubr.msk.f32.mxu0 %vm57_vm0, %v30_v30  ;;  %889 = vmatprep.mubr.msk.f32.mxu1 %vm57_vm0, %v46_v31 }
  0x23   :  { %866 = vmatmul.mubr.msk.f32.gmra.mxu0 %vm57_vm0, %v31_v32  ;;  %890 = vmatmul.mubr.msk.f32.gmra.mxu1 %vm57_vm0, %v47_v33 }
  0xc7   :  { %v846_v35 = vpop.f32.mrf.mxu0  ;;  %v870_v36 = vpop.f32.mrf.mxu1 }
  0xc8   :  { %v226_v37 = vadd.f32 %v846_v35, %v1060_v34  ;;  %v306_v38 = vadd.f32 %v870_v36, %v1060_v34 }
  0xc9   :  { %v220_v39 = vpop.f32.mrf.mxu0  ;;  %v300_v40 = vpop.f32.mrf.mxu1 }
  0xca   :  { %v775_v41 = vpack.c.bf16 %v226_v37, %v226_v37  ;;  %v791_v42 = vpack.c.bf16 %v306_v38, %v306_v38  ;;  %v221_v43 = vadd.f32 %v1060_v34, %v220_v39  ;;  %v301_v44 = vadd.f32 %v1060_v34, %v300_v40  ;;  %606 = vrot.lane.b32.xlu1 %v306_v38, %s897_s0 }
  0xcb   :  { %574 = vrot.lane.b32.xlu0 %v226_v37, %s897_s0  ;;  %v849_v45 = vpop.f32.mrf.mxu0  ;;  %v873_v46 = vpop.f32.mrf.mxu1 }
  0xcc   :  { %509 = vst.msk [vmem:[%s1415_s3 + $0x4] sm:$0xf] %vm507_vm1, %v775_v41  ;;  %525 = vst.msk [vmem:[%s1415_s3 + $0x44] sm:$0xf] %vm507_vm1, %v791_v42  ;;  %v774_v47 = vpack.c.bf16 %v221_v43, %v221_v43  ;;  %v790_v48 = vpack.c.bf16 %v301_v44, %v301_v44  ;;  %v236_v49 = vadd.f32 %v849_v45, %v1060_v34 }
  0xcd   :  { %v316_v50 = vadd.f32 %v873_v46, %v1060_v34  ;;  %v230_v51 = vpop.f32.mrf.mxu0  ;;  %v310_v52 = vpop.f32.mrf.mxu1 }
  0xce   :  { %508 = vst.msk [vmem:[%s1415_s3] sm:$0xf] %vm507_vm1, %v774_v47  ;;  %524 = vst.msk [vmem:[%s1415_s3 + $0x40] sm:$0xf] %vm507_vm1, %v790_v48  ;;  %v777_v53 = vpack.c.bf16 %v236_v49, %v236_v49  ;;  %v231_v54 = vadd.f32 %v1060_v34, %v230_v51  ;;  %578 = vrot.lane.b32.xlu1 %v236_v49, %s897_s0  ;;  %v311_v56 = vadd.f32 %v1060_v34, %v310_v52 }
  0xcf   :  { %v793_v55 = vpack.c.bf16 %v316_v50, %v316_v50  ;;  %572 = vrot.lane.b32.xlu0 %v221_v43, %s897_s0  ;;  %v852_v57 = vpop.f32.mrf.mxu0  ;;  %v876_v58 = vpop.f32.mrf.mxu1 }
  0xd0   :  { %511 = vst.msk [vmem:[%s1415_s3 + $0xc] sm:$0xf] %vm507_vm1, %v777_v53  ;;  %v776_v59 = vpack.c.bf16 %v231_v54, %v231_v54  ;;  %v792_v60 = vpack.c.bf16 %v311_v56, %v311_v56  ;;  %v246_v61 = vadd.f32 %v852_v57, %v1060_v34  ;;  %v326_v62 = vadd.f32 %v876_v58, %v1060_v34 }
  0xd1   :  { %527 = vst.msk [vmem:[%s1415_s3 + $0x4c] sm:$0xf] %vm507_vm1, %v793_v55  ;;  %v240_v63 = vpop.f32.mrf.mxu0  ;;  %v320_v0 = vpop.f32.mrf.mxu1 }
  0xd2   :  { %510 = vst.msk [vmem:[%s1415_s3 + $0x8] sm:$0xf] %vm507_vm1, %v776_v59  ;;  %526 = vst.msk [vmem:[%s1415_s3 + $0x48] sm:$0xf] %vm507_vm1, %v792_v60  ;;  %610 = vrot.lane.b32.xlu1 %v316_v50, %s897_s0  ;;  %v779_v1 = vpack.c.bf16 %v246_v61, %v246_v61  ;;  %v241_v2 = vadd.f32 %v1060_v34, %v240_v63  ;;  %v795_v3 = vpack.c.bf16 %v326_v62, %v326_v62 }
  0xd3   :  { %v321_v4 = vadd.f32 %v1060_v34, %v320_v0  ;;  %604 = vrot.lane.b32.xlu0 %v301_v44, %s897_s0  ;;  %v855_v5 = vpop.f32.mrf.mxu0  ;;  %v879_v6 = vpop.f32.mrf.mxu1 }
  0xd4   :  { %513 = vst.msk [vmem:[%s1415_s3 + $0x14] sm:$0xf] %vm507_vm1, %v779_v1  ;;  %v778_v7 = vpack.c.bf16 %v241_v2, %v241_v2  ;;  %529 = vst.msk [vmem:[%s1415_s3 + $0x54] sm:$0xf] %vm507_vm1, %v795_v3  ;;  %v256_v9 = vadd.f32 %v855_v5, %v1060_v34  ;;  %v1122_v10 = vadd.f32 %v879_v6, %v1060_v34 }
  0xd5   :  { %v794_v8 = vpack.c.bf16 %v321_v4, %v321_v4  ;;  %v250_v11 = vpop.f32.mrf.mxu0  ;;  %v330_v12 = vpop.f32.mrf.mxu1 }
  0xd6   :  { %512 = vst.msk [vmem:[%s1415_s3 + $0x10] sm:$0xf] %vm507_vm1, %v778_v7  ;;  %576 = vrot.lane.b32.xlu1 %v231_v54, %s897_s0  ;;  %v781_v13 = vpack.c.bf16 %v256_v9, %v256_v9  ;;  %v251_v14 = vadd.f32 %v1060_v34, %v250_v11  ;;  %v797_v15 = vpack.c.bf16 %v1122_v10, %v1122_v10 }
  0xd7   :  { %528 = vst.msk [vmem:[%s1415_s3 + $0x50] sm:$0xf] %vm507_vm1, %v794_v8  ;;  %v1137_v16 = vadd.f32 %v1060_v34, %v330_v12  ;;  %608 = vrot.lane.b32.xlu0 %v311_v56, %s897_s0  ;;  %v858_v17 = vpop.f32.mrf.mxu0  ;;  %v882_v18 = vpop.f32.mrf.mxu1 }
  0xd8   :  { %515 = vst.msk [vmem:[%s1415_s3 + $0x1c] sm:$0xf] %vm507_vm1, %v781_v13  ;;  %v780_v19 = vpack.c.bf16 %v251_v14, %v251_v14  ;;  %531 = vst.msk [vmem:[%s1415_s3 + $0x5c] sm:$0xf] %vm507_vm1, %v797_v15  ;;  %v1151_v21 = vadd.f32 %v858_v17, %v1060_v34  ;;  %v1154_v22 = vadd.f32 %v882_v18, %v1060_v34 }
  0xd9   :  { %v796_v20 = vpack.c.bf16 %v1137_v16, %v1137_v16  ;;  %v260_v23 = vpop.f32.mrf.mxu0  ;;  %v340_v24 = vpop.f32.mrf.mxu1 }
  0xda   :  { %582 = vrot.lane.b32.xlu1 %v246_v61, %s897_s0  ;;  %514 = vst.msk [vmem:[%s1415_s3 + $0x18] sm:$0xf] %vm507_vm1, %v780_v19  ;;  %v783_v25 = vpack.c.bf16 %v1151_v21, %v1151_v21  ;;  %v1168_v26 = vadd.f32 %v1060_v34, %v260_v23  ;;  %v799_v27 = vpack.c.bf16 %v1154_v22, %v1154_v22 }
  0xdb   :  { %530 = vst.msk [vmem:[%s1415_s3 + $0x58] sm:$0xf] %vm507_vm1, %v796_v20  ;;  %v1173_v28 = vadd.f32 %v1060_v34, %v340_v24  ;;  %580 = vrot.lane.b32.xlu0 %v241_v2, %s897_s0  ;;  %v861_v29 = vpop.f32.mrf.mxu0  ;;  %v885_v30 = vpop.f32.mrf.mxu1 }
  0xdc   :  { %517 = vst.msk [vmem:[%s1415_s3 + $0x24] sm:$0xf] %vm507_vm1, %v783_v25  ;;  %v782_v31 = vpack.c.bf16 %v1168_v26, %v1168_v26  ;;  %533 = vst.msk [vmem:[%s1415_s3 + $0x64] sm:$0xf] %vm507_vm1, %v799_v27  ;;  %v276_v33 = vadd.f32 %v861_v29, %v1060_v34  ;;  %v356_v35 = vadd.f32 %v885_v30, %v1060_v34 }
  0xdd   :  { %v798_v32 = vpack.c.bf16 %v1173_v28, %v1173_v28  ;;  %v270_v36 = vpop.f32.mrf.mxu0  ;;  %v350_v37 = vpop.f32.mrf.mxu1 }
  0xde   :  { %614 = vrot.lane.b32.xlu1 %v326_v62, %s897_s0  ;;  %516 = vst.msk [vmem:[%s1415_s3 + $0x20] sm:$0xf] %vm507_vm1, %v782_v31  ;;  %v785_v38 = vpack.c.bf16 %v276_v33, %v276_v33  ;;  %v271_v39 = vadd.f32 %v1060_v34, %v270_v36  ;;  %v801_v40 = vpack.c.bf16 %v356_v35, %v356_v35 }
  0xdf   :  { %532 = vst.msk [vmem:[%s1415_s3 + $0x60] sm:$0xf] %vm507_vm1, %v798_v32  ;;  %v351_v41 = vadd.f32 %v1060_v34, %v350_v37  ;;  %612 = vrot.lane.b32.xlu0 %v321_v4, %s897_s0  ;;  %v864_v42 = vpop.f32.mrf.mxu0  ;;  %v888_v43 = vpop.f32.mrf.mxu1 }
  0xe0   :  { %519 = vst.msk [vmem:[%s1415_s3 + $0x2c] sm:$0xf] %vm507_vm1, %v785_v38  ;;  %v784_v44 = vpack.c.bf16 %v271_v39, %v271_v39  ;;  %535 = vst.msk [vmem:[%s1415_s3 + $0x6c] sm:$0xf] %vm507_vm1, %v801_v40  ;;  %v286_v46 = vadd.f32 %v864_v42, %v1060_v34  ;;  %v366_v47 = vadd.f32 %v888_v43, %v1060_v34 }
  0xe1   :  { %v800_v45 = vpack.c.bf16 %v351_v41, %v351_v41  ;;  %v280_v48 = vpop.f32.mrf.mxu0  ;;  %v360_v49 = vpop.f32.mrf.mxu1 }
  0xe2   :  { %586 = vrot.lane.b32.xlu1 %v256_v9, %s897_s0  ;;  %518 = vst.msk [vmem:[%s1415_s3 + $0x28] sm:$0xf] %vm507_vm1, %v784_v44  ;;  %v787_v50 = vpack.c.bf16 %v286_v46, %v286_v46  ;;  %v281_v51 = vadd.f32 %v1060_v34, %v280_v48  ;;  %v803_v52 = vpack.c.bf16 %v366_v47, %v366_v47 }
  0xe3   :  { %534 = vst.msk [vmem:[%s1415_s3 + $0x68] sm:$0xf] %vm507_vm1, %v800_v45  ;;  %v361_v53 = vadd.f32 %v1060_v34, %v360_v49  ;;  %584 = vrot.lane.b32.xlu0 %v251_v14, %s897_s0  ;;  %v867_v54 = vpop.f32.mrf.mxu0  ;;  %v891_v55 = vpop.f32.mrf.mxu1 }
  0xe4   :  { %521 = vst.msk [vmem:[%s1415_s3 + $0x34] sm:$0xf] %vm507_vm1, %v787_v50  ;;  %v786_v56 = vpack.c.bf16 %v281_v51, %v281_v51  ;;  %537 = vst.msk [vmem:[%s1415_s3 + $0x74] sm:$0xf] %vm507_vm1, %v803_v52  ;;  %v296_v58 = vadd.f32 %v867_v54, %v1060_v34  ;;  %v376_v59 = vadd.f32 %v891_v55, %v1060_v34 }
  0xe5   :  { %v802_v57 = vpack.c.bf16 %v361_v53, %v361_v53  ;;  %v290_v60 = vpop.f32.mrf.mxu0  ;;  %v370_v61 = vpop.f32.mrf.mxu1 }
  0xe6   :  { %618 = vrot.lane.b32.xlu1 %v1122_v10, %s897_s0  ;;  %520 = vst.msk [vmem:[%s1415_s3 + $0x30] sm:$0xf] %vm507_vm1, %v786_v56  ;;  %v789_v62 = vpack.c.bf16 %v296_v58, %v296_v58  ;;  %v291_v63 = vadd.f32 %v1060_v34, %v290_v60  ;;  %v805_v0 = vpack.c.bf16 %v376_v59, %v376_v59 }
  0xe7   :  { %536 = vst.msk [vmem:[%s1415_s3 + $0x70] sm:$0xf] %vm507_vm1, %v802_v57  ;;  %v371_v1 = vadd.f32 %v1060_v34, %v370_v61  ;;  %616 = vrot.lane.b32.xlu0 %v1137_v16, %s897_s0 }
  0xe8   :  { %523 = vst.msk [vmem:[%s1415_s3 + $0x3c] sm:$0xf] %vm507_vm1, %v789_v62  ;;  %v788_v2 = vpack.c.bf16 %v291_v63, %v291_v63  ;;  %539 = vst.msk [vmem:[%s1415_s3 + $0x7c] sm:$0xf] %vm507_vm1, %v805_v0 }
  0xe9   :  { %v804_v3 = vpack.c.bf16 %v371_v1, %v371_v1 }
  0xea   :  { %590 = vrot.lane.b32.xlu1 %v1151_v21, %s897_s0  ;;  %522 = vst.msk [vmem:[%s1415_s3 + $0x38] sm:$0xf] %vm507_vm1, %v788_v2 }
  0xeb   :  { %538 = vst.msk [vmem:[%s1415_s3 + $0x78] sm:$0xf] %vm507_vm1, %v804_v3  ;;  %588 = vrot.lane.b32.xlu0 %v1168_v26, %s897_s0 }
  0xee   :  { %622 = vrot.lane.b32.xlu1 %v1154_v22, %s897_s0 }
  0xef   :  { %620 = vrot.lane.b32.xlu0 %v1173_v28, %s897_s0 }
  0xf2   :  { %594 = vrot.lane.b32.xlu1 %v276_v33, %s897_s0 }
  0xf3   :  { %592 = vrot.lane.b32.xlu0 %v271_v39, %s897_s0 }
  0xf6   :  { %626 = vrot.lane.b32.xlu1 %v356_v35, %s897_s0 }
  0xf7   :  { %624 = vrot.lane.b32.xlu0 %v351_v41, %s897_s0 }
  0xfa   :  { %598 = vrot.lane.b32.xlu1 %v286_v46, %s897_s0 }
  0xfb   :  { %596 = vrot.lane.b32.xlu0 %v281_v51, %s897_s0 }
  0xfe   :  { %630 = vrot.lane.b32.xlu1 %v366_v47, %s897_s0 }
  0xff   :  { %628 = vrot.lane.b32.xlu0 %v361_v53, %s897_s0 }
 0x102   :  { %602 = vrot.lane.b32.xlu1 %v296_v58, %s897_s0 }
 0x103   :  { %600 = vrot.lane.b32.xlu0 %v291_v63, %s897_s0 }
 0x106   :  { %634 = vrot.lane.b32.xlu1 %v376_v59, %s897_s0 }
 0x107   :  { %632 = vrot.lane.b32.xlu0 %v371_v1, %s897_s0 }
 0x13c   :  { %v607_v34 = vpop.permute.xlu1 %606 }
 0x13d   :  { %686 = vst.msk [vmem:[%s1416_s4 + $0x88] sm:$0xff] %vm668_vm2, %v607_v34  ;;  %v575_v4 = vpop.permute.xlu0 %574 }
 0x13e   :  { %670 = vst.msk [vmem:[%s1416_s4 + $0x8] sm:$0xff] %vm668_vm2, %v575_v4 }
 0x140   :  { %v579_v5 = vpop.permute.xlu1 %578 }
 0x141   :  { %672 = vst.msk [vmem:[%s1416_s4 + $0x18] sm:$0xff] %vm668_vm2, %v579_v5  ;;  %v573_v6 = vpop.permute.xlu0 %572 }
 0x142   :  { %669 = vst.msk [vmem:[%s1416_s4] sm:$0xff] %vm668_vm2, %v573_v6 }
 0x144   :  { %v611_v7 = vpop.permute.xlu1 %610 }
 0x145   :  { %688 = vst.msk [vmem:[%s1416_s4 + $0x98] sm:$0xff] %vm668_vm2, %v611_v7  ;;  %v605_v8 = vpop.permute.xlu0 %604 }
 0x146   :  { %685 = vst.msk [vmem:[%s1416_s4 + $0x80] sm:$0xff] %vm668_vm2, %v605_v8 }
 0x148   :  { %v577_v9 = vpop.permute.xlu1 %576 }
 0x149   :  { %671 = vst.msk [vmem:[%s1416_s4 + $0x10] sm:$0xff] %vm668_vm2, %v577_v9  ;;  %v609_v10 = vpop.permute.xlu0 %608 }
 0x14a   :  { %687 = vst.msk [vmem:[%s1416_s4 + $0x90] sm:$0xff] %vm668_vm2, %v609_v10 }
 0x14c   :  { %v583_v11 = vpop.permute.xlu1 %582 }
 0x14d   :  { %674 = vst.msk [vmem:[%s1416_s4 + $0x28] sm:$0xff] %vm668_vm2, %v583_v11  ;;  %v581_v12 = vpop.permute.xlu0 %580 }
 0x14e   :  { %673 = vst.msk [vmem:[%s1416_s4 + $0x20] sm:$0xff] %vm668_vm2, %v581_v12 }
 0x150   :  { %v615_v13 = vpop.permute.xlu1 %614 }
 0x151   :  { %690 = vst.msk [vmem:[%s1416_s4 + $0xa8] sm:$0xff] %vm668_vm2, %v615_v13  ;;  %v613_v14 = vpop.permute.xlu0 %612 }
 0x152   :  { %689 = vst.msk [vmem:[%s1416_s4 + $0xa0] sm:$0xff] %vm668_vm2, %v613_v14 }
 0x154   :  { %v587_v15 = vpop.permute.xlu1 %586 }
 0x155   :  { %676 = vst.msk [vmem:[%s1416_s4 + $0x38] sm:$0xff] %vm668_vm2, %v587_v15  ;;  %v585_v16 = vpop.permute.xlu0 %584 }
 0x156   :  { %675 = vst.msk [vmem:[%s1416_s4 + $0x30] sm:$0xff] %vm668_vm2, %v585_v16 }
 0x158   :  { %v619_v17 = vpop.permute.xlu1 %618 }
 0x159   :  { %692 = vst.msk [vmem:[%s1416_s4 + $0xb8] sm:$0xff] %vm668_vm2, %v619_v17  ;;  %v617_v18 = vpop.permute.xlu0 %616 }
 0x15a   :  { %691 = vst.msk [vmem:[%s1416_s4 + $0xb0] sm:$0xff] %vm668_vm2, %v617_v18 }
 0x15c   :  { %v591_v19 = vpop.permute.xlu1 %590 }
 0x15d   :  { %678 = vst.msk [vmem:[%s1416_s4 + $0x48] sm:$0xff] %vm668_vm2, %v591_v19  ;;  %v589_v20 = vpop.permute.xlu0 %588 }
 0x15e   :  { %677 = vst.msk [vmem:[%s1416_s4 + $0x40] sm:$0xff] %vm668_vm2, %v589_v20 }
 0x160   :  { %v623_v21 = vpop.permute.xlu1 %622 }
 0x161   :  { %694 = vst.msk [vmem:[%s1416_s4 + $0xc8] sm:$0xff] %vm668_vm2, %v623_v21  ;;  %v621_v22 = vpop.permute.xlu0 %620 }
 0x162   :  { %693 = vst.msk [vmem:[%s1416_s4 + $0xc0] sm:$0xff] %vm668_vm2, %v621_v22 }
 0x164   :  { %v595_v23 = vpop.permute.xlu1 %594 }
 0x165   :  { %680 = vst.msk [vmem:[%s1416_s4 + $0x58] sm:$0xff] %vm668_vm2, %v595_v23  ;;  %v593_v24 = vpop.permute.xlu0 %592 }
 0x166   :  { %679 = vst.msk [vmem:[%s1416_s4 + $0x50] sm:$0xff] %vm668_vm2, %v593_v24 }
 0x168   :  { %v627_v25 = vpop.permute.xlu1 %626 }
 0x169   :  { %696 = vst.msk [vmem:[%s1416_s4 + $0xd8] sm:$0xff] %vm668_vm2, %v627_v25  ;;  %v625_v26 = vpop.permute.xlu0 %624 }
 0x16a   :  { %695 = vst.msk [vmem:[%s1416_s4 + $0xd0] sm:$0xff] %vm668_vm2, %v625_v26 }
 0x16c   :  { %v599_v27 = vpop.permute.xlu1 %598 }
 0x16d   :  { %682 = vst.msk [vmem:[%s1416_s4 + $0x68] sm:$0xff] %vm668_vm2, %v599_v27  ;;  %v597_v28 = vpop.permute.xlu0 %596 }
 0x16e   :  { %681 = vst.msk [vmem:[%s1416_s4 + $0x60] sm:$0xff] %vm668_vm2, %v597_v28 }
 0x170   :  { %v631_v29 = vpop.permute.xlu1 %630 }
 0x171   :  { %698 = vst.msk [vmem:[%s1416_s4 + $0xe8] sm:$0xff] %vm668_vm2, %v631_v29  ;;  %v629_v30 = vpop.permute.xlu0 %628 }
 0x172   :  { %697 = vst.msk [vmem:[%s1416_s4 + $0xe0] sm:$0xff] %vm668_vm2, %v629_v30 }
 0x174   :  { %v603_v31 = vpop.permute.xlu1 %602 }
 0x175   :  { %684 = vst.msk [vmem:[%s1416_s4 + $0x78] sm:$0xff] %vm668_vm2, %v603_v31  ;;  %v601_v32 = vpop.permute.xlu0 %600 }
 0x176   :  { %683 = vst.msk [vmem:[%s1416_s4 + $0x70] sm:$0xff] %vm668_vm2, %v601_v32 }
 0x178   :  { %v635_v33 = vpop.permute.xlu1 %634 }
 0x179   :  { %700 = vst.msk [vmem:[%s1416_s4 + $0xf8] sm:$0xff] %vm668_vm2, %v635_v33  ;;  %v633_v35 = vpop.permute.xlu0 %632 }
 0x17a   :  { %699 = vst.msk [vmem:[%s1416_s4 + $0xf0] sm:$0xff] %vm668_vm2, %v633_v35 }

</bundles_post_ra>
